<compile_context>
chip_gen: v6e
topology: v6e:2x2x1
jax: 0.10.0
libtpu: 0.0.40
codegen_flags: <defaults>
</compile_context>

<pallas_src>
import functools
import math

import jax
import jax.numpy as jnp
from jax.experimental import pallas as pl
from jax.experimental.pallas import tpu as pltpu


# ----------------------------------------------------------------------------
# Generation-dependent budgets (computed once; conservative fallback = v7x).
# ----------------------------------------------------------------------------
def _vmem_limit_bytes():
    try:
        info = pltpu.get_tpu_info()
        cap = getattr(info, "vmem_capacity_bytes", None) or 0
    except Exception:
        cap = 0
    # 128 MiB VMEM parts (v5e/v6e) -> 64 MiB scoped limit; v7x (64 MiB) -> 32.
    return (64 if cap >= 100 * 1024 * 1024 else 32) * 1024 * 1024


_VMEM_LIMIT = _vmem_limit_bytes()
_BIG_VMEM = _VMEM_LIMIT > 32 * 1024 * 1024
_TQ_CAP = 512          # attention query tile (multiple of 128)
_TK_CAP = 256          # attention key/value tile (multiple of 128)
_PROJ_TM_CAP = 512 if _BIG_VMEM else 256
_MERGE_TM_CAP = 256


def _round_up(x, m):
    return ((x + m - 1) // m) * m


def _seq_tile(s, cap):
    """(tile, padded_length) for a sequence axis."""
    if s <= cap:
        return s, s
    return cap, _round_up(s, cap)


def _pick_rows_tile(s, cap):
    """Row tile that divides s (s is either small or a multiple of 128s)."""
    if s <= cap:
        return s
    if s % cap == 0:
        return cap
    for t in range(cap - (cap % 8), 7, -8):
        if s % t == 0:
            return t
    return s


# ----------------------------------------------------------------------------
# Kernel 1: projection straight into head-major layout.
#   x:(B, S, D) @ W_head:(H, D, d_k)  ->  (B, H, S, d_k)
# Single K step (K = D fits VMEM for typical d_model); x block is re-used
# across the (innermost) head axis because its block index does not change.
# ----------------------------------------------------------------------------
def _proj_heads_kernel(x_ref, w_ref, o_ref):
    # x_ref: (1, tm, D)   w_ref: (1, D, d_k)   o_ref: (1, 1, tm, d_k)
    o_ref[0, 0] = jnp.dot(
        x_ref[0], w_ref[0], preferred_element_type=jnp.float32
    ).astype(o_ref.dtype)


def _proj_to_heads(x, w_heads, *, tm, out_dtype):
    B, S_pad, D = x.shape
    H, _, d_k = w_heads.shape
    grid = (B, S_pad // tm, H)
    return pl.pallas_call(
        _proj_heads_kernel,
        out_shape=jax.ShapeDtypeStruct((B, H, S_pad, d_k), out_dtype),
        grid_spec=pltpu.PrefetchScalarGridSpec(
            num_scalar_prefetch=0,
            grid=grid,
            in_specs=[
                pl.BlockSpec((1, tm, D), lambda b, si, hd: (b, si, 0)),
                pl.BlockSpec((1, D, d_k), lambda b, si, hd: (hd, 0, 0)),
            ],
            out_specs=pl.BlockSpec(
                (1, 1, tm, d_k), lambda b, si, hd: (b, hd, si, 0)
            ),
        ),
        compiler_params=pltpu.CompilerParams(
            dimension_semantics=("parallel", "parallel", "parallel"),
            vmem_limit_bytes=_VMEM_LIMIT,
        ),
    )(x, w_heads)


# ----------------------------------------------------------------------------
# Kernel 2: flash-style attention, all (G) heads of one batch element per step.
# grid = (B, h//G, Sq//tq, Skv//tk), kv axis last ("arbitrary").
# ----------------------------------------------------------------------------
def _mha_attention_kernel(q_ref, k_ref, v_ref, mask_ref, o_ref,
                          m_sc, l_sc, acc_sc, *, scale):
    # q_ref: (1, G, tq, d_k)  k_ref/v_ref: (1, G, tk, d_k)  mask_ref: (1, tq, tk)
    ki = pl.program_id(3)

    @pl.when(ki == 0)
    def _():
        m_sc[...] = jnp.full_like(m_sc, -jnp.inf)
        l_sc[...] = jnp.zeros_like(l_sc)
        acc_sc[...] = jnp.zeros_like(acc_sc)

    # scale folded into q: tq*d_k multiplies instead of tq*tk
    qs = q_ref[0] * scale                                   # (G, tq, d_k)
    s = jnp.einsum("gqd,gkd->gqk", qs, k_ref[0],
                   preferred_element_type=jnp.float32)      # (G, tq, tk) f32
    # masked_fill_(mask == 0, -1e9), same constant as the PyTorch module.
    # (Keep -1e9 finite: fully-masked rows stay NaN-free and match torch.)
    keep = mask_ref[...].astype(jnp.float32)                # (1, tq, tk)
    s = jnp.where(keep == 0.0, jnp.float32(-1e9), s)

    m_prev = m_sc[...]
    m_new = jnp.maximum(m_prev, s.max(axis=-1, keepdims=True))
    alpha = jnp.exp(m_prev - m_new)
    p = jnp.exp(s - m_new)

    l_sc[...] = alpha * l_sc[...] + p.sum(axis=-1, keepdims=True)
    acc_sc[...] = alpha * acc_sc[...] + jnp.einsum(
        "gqk,gkd->gqd", p.astype(v_ref.dtype), v_ref[0],
        preferred_element_type=jnp.float32)
    m_sc[...] = m_new

    @pl.when(ki == pl.num_programs(3) - 1)
    def _():
        inv = pl.reciprocal(l_sc[...], approx=True)
        o_ref[0] = (acc_sc[...] * inv).astype(o_ref.dtype)


def _attention(q_hd, k_hd, v_hd, mask3, *, h, G, scale, tq, tk,
               q_goff, k_goff, v_goff, out_dtype):
    """q_hd/k_hd/v_hd: (B, H*, S_pad, d_k) head-major; mask3: (1|B, Sq, Skv) i8."""
    B = q_hd.shape[0]
    Sq_pad, d_k = q_hd.shape[2], q_hd.shape[3]
    Skv_pad = k_hd.shape[2]
    mb = mask3.shape[0]
    grid = (B, h // G, Sq_pad // tq, Skv_pad // tk)

    if mb == 1:
        mask_map = lambda b, g, qi, ki: (0, qi, ki)
    else:
        mask_map = lambda b, g, qi, ki: (b, qi, ki)

    kernel = functools.partial(_mha_attention_kernel, scale=scale)

    return pl.pallas_call(
        kernel,
        out_shape=jax.ShapeDtypeStruct((B, h, Sq_pad, d_k), out_dtype),
        grid_spec=pltpu.PrefetchScalarGridSpec(
            num_scalar_prefetch=0,
            grid=grid,
            in_specs=[
                pl.BlockSpec((1, G, tq, d_k),
                             lambda b, g, qi, ki: (b, g + q_goff, qi, 0)),
                pl.BlockSpec((1, G, tk, d_k),
                             lambda b, g, qi, ki: (b, g + k_goff, ki, 0)),
                pl.BlockSpec((1, G, tk, d_k),
                             lambda b, g, qi, ki: (b, g + v_goff, ki, 0)),
                pl.BlockSpec((1, tq, tk), mask_map),
            ],
            out_specs=pl.BlockSpec((1, G, tq, d_k),
                                   lambda b, g, qi, ki: (b, g, qi, 0)),
            scratch_shapes=[
                pltpu.VMEM((G, tq, 1), jnp.float32),     # running max
                pltpu.VMEM((G, tq, 1), jnp.float32),     # running sum-exp
                pltpu.VMEM((G, tq, d_k), jnp.float32),   # output accumulator
            ],
        ),
        compiler_params=pltpu.CompilerParams(
            dimension_semantics=("parallel", "parallel", "parallel",
                                 "arbitrary"),
            vmem_limit_bytes=_VMEM_LIMIT,
        ),
    )(q_hd, k_hd, v_hd, mask3)


# ----------------------------------------------------------------------------
# Kernel 3: output projection that consumes the head-major attention output.
#   att:(B, h, S, d_k) @ W_o_head:(h, d_k, D) -> (B, S, D); head axis = K.
# ----------------------------------------------------------------------------
def _proj_merge_kernel(x_ref, w_ref, o_ref, acc_ref):
    # x_ref: (1, 1, tm, d_k)  w_ref: (1, d_k, D)  o_ref: (1, tm, D)
    hd = pl.program_id(2)

    @pl.when(hd == 0)
    def _():
        acc_ref[...] = jnp.zeros_like(acc_ref)

    acc_ref[...] += jnp.dot(x_ref[0, 0], w_ref[0],
                            preferred_element_type=jnp.float32)

    @pl.when(hd == pl.num_programs(2) - 1)
    def _():
        o_ref[0] = acc_ref[...].astype(o_ref.dtype)


def _proj_from_heads(x_hd, w_merge, *, tm, out_dtype):
    B, h, S_pad, d_k = x_hd.shape
    D = w_merge.shape[-1]
    grid = (B, S_pad // tm, h)
    return pl.pallas_call(
        _proj_merge_kernel,
        out_shape=jax.ShapeDtypeStruct((B, S_pad, D), out_dtype),
        grid_spec=pltpu.PrefetchScalarGridSpec(
            num_scalar_prefetch=0,
            grid=grid,
            in_specs=[
                pl.BlockSpec((1, 1, tm, d_k), lambda b, si, hd: (b, hd, si, 0)),
                pl.BlockSpec((1, d_k, D), lambda b, si, hd: (hd, 0, 0)),
            ],
            out_specs=pl.BlockSpec((1, tm, D), lambda b, si, hd: (b, si, 0)),
            scratch_shapes=[pltpu.VMEM((tm, D), jnp.float32)],
        ),
        compiler_params=pltpu.CompilerParams(
            dimension_semantics=("parallel", "parallel", "arbitrary"),
            vmem_limit_bytes=_VMEM_LIMIT,
        ),
    )(x_hd, w_merge)


# ----------------------------------------------------------------------------
# Module wrapper: MultiHeadAttentionBlock.forward
# ----------------------------------------------------------------------------
@functools.partial(jax.jit, static_argnames=("h", "mxu_dtype", "fused_qkv"))
def _mha_impl(q, k, v, mask, w_q, w_k, w_v, w_o, *, h, mxu_dtype, fused_qkv):
    B, Sq, D = q.shape
    Skv = k.shape[1]
    assert D % h == 0, "d_model is not divisible by h"
    d_k = D // h
    orig_dtype = q.dtype
    cdt = orig_dtype if mxu_dtype is None else jnp.dtype(mxu_dtype)

    # head-group size: all heads per attention step (cap 8), amortizes the
    # mask DMA and grid-step overhead across G heads.
    G = 1
    for g in range(1, min(h, 8) + 1):
        if h % g == 0:
            G = g

    # ---- attention tiles & (masked) sequence padding ------------------------
    tq, Sq_pad = _seq_tile(Sq, _TQ_CAP)
    if fused_qkv:
        # q/k/v share storage -> common padded length; tk must divide Sq_pad.
        Skv_pad = Sq_pad
        if Sq_pad <= _TK_CAP:
            tk = Sq_pad
        elif Sq_pad % _TK_CAP == 0:
            tk = _TK_CAP
        else:
            tk = tq
    else:
        tk, Skv_pad = _seq_tile(Skv, _TK_CAP)

    def pad_seq(x, s_to):
        s_from = x.shape[1]
        if s_to == s_from:
            return x
        return jnp.pad(x, ((0, 0), (0, s_to - s_from), (0, 0)))

    qc = pad_seq(q.astype(cdt), Sq_pad)
    if fused_qkv:
        kc = vc = qc
    else:
        kc = pad_seq(k.astype(cdt), Skv_pad)
        vc = pad_seq(v.astype(cdt), Skv_pad)

    # ---- mask -> (1 or B, Sq_pad, Skv_pad) int8 (pad keys are masked out) ----
    if mask is None:
        m = jnp.ones((1, Sq, Skv), jnp.int8)
    else:
        m = jnp.asarray(mask)
        if m.ndim == 4:
            assert m.shape[1] == 1, "per-head masks are not supported"
            m = m[:, 0]
        if m.ndim == 2:
            m = m[None]
    mb = m.shape[0]
    m = jnp.broadcast_to(m, (mb, Sq, Skv)).astype(jnp.int8)
    if (Sq_pad, Skv_pad) != (Sq, Skv):
        m = jnp.pad(m, ((0, 0), (0, Sq_pad - Sq), (0, Skv_pad - Skv)))

    # ---- weights in per-head layout (tiny one-time reshapes) ----------------
    def to_head_weights(w):                      # (D, D) -> (h, D, d_k)
        return w.reshape(D, h, d_k).transpose(1, 0, 2).astype(cdt)

    tm_q = _pick_rows_tile(Sq_pad, _PROJ_TM_CAP)

    # ---- Q/K/V projections straight into (B, H, S, d_k) ---------------------
    if fused_qkv:
        w_qkv = jnp.concatenate(
            [to_head_weights(w_q), to_head_weights(w_k), to_head_weights(w_v)],
            axis=0)                                           # (3h, D, d_k)
        qkv_hd = _proj_to_heads(qc, w_qkv, tm=tm_q, out_dtype=cdt)
        q_hd = k_hd = v_hd = qkv_hd
        offs = (0, h // G, 2 * (h // G))
    else:
        tm_kv = _pick_rows_tile(Skv_pad, _PROJ_TM_CAP)
        q_hd = _proj_to_heads(qc, to_head_weights(w_q), tm=tm_q, out_dtype=cdt)
        k_hd = _proj_to_heads(kc, to_head_weights(w_k), tm=tm_kv, out_dtype=cdt)
        v_hd = _proj_to_heads(vc, to_head_weights(w_v), tm=tm_kv, out_dtype=cdt)
        offs = (0, 0, 0)

    # ---- flash attention (mask shared across the G heads of a step) ---------
    att = _attention(q_hd, k_hd, v_hd, m, h=h, G=G,
                     scale=1.0 / math.sqrt(d_k), tq=tq, tk=tk,
                     q_goff=offs[0], k_goff=offs[1], v_goff=offs[2],
                     out_dtype=cdt)                           # (B, h, Sq_pad, d_k)

    # ---- output projection (head axis = reduction), back to input dtype -----
    w_merge = w_o.reshape(h, d_k, D).astype(cdt)              # (h, d_k, D)
    out = _proj_from_heads(att, w_merge,
                           tm=_pick_rows_tile(Sq_pad, _MERGE_TM_CAP),
                           out_dtype=orig_dtype)              # (B, Sq_pad, D)
    if Sq_pad != Sq:
        out = out[:, :Sq]
    return out


def multi_head_attention_block(q, k, v, mask, w_q, w_k, w_v, w_o, *, h,
                               mxu_dtype=jnp.bfloat16):
    """Forward of MultiHeadAttentionBlock.

    q/k/v: (B, S, d_model); mask broadcastable to (B, 1, Sq, Skv) (1=keep);
    weights (d_model, d_model) in `y = x @ W` layout (transpose of nn.Linear).
    mxu_dtype: dtype of MXU operands (bf16 by default; None = exact input dtype).
    """
    fused = (q is k) and (k is v)           # self-attention: fuse QKV weights
    return _mha_impl(q, k, v, mask, w_q, w_k, w_v, w_o,
                     h=h, mxu_dtype=mxu_dtype, fused_qkv=fused)


# ----------------------------------------------------------------------------
# Pure-JAX reference (mirrors the PyTorch module exactly, f32 throughout)
# ----------------------------------------------------------------------------
def reference(q, k, v, mask, w_q, w_k, w_v, w_o, h):
    B, Sq, D = q.shape
    d_k = D // h

    def proj(x, w):
        return jnp.einsum("bsd,de->bse", x, w)

    Q = proj(q, w_q).reshape(B, Sq, h, d_k).transpose(0, 2, 1, 3)
    K = proj(k, w_k).reshape(B, -1, h, d_k).transpose(0, 2, 1, 3)
    V = proj(v, w_v).reshape(B, -1, h, d_k).transpose(0, 2, 1, 3)

    scores = jnp.einsum("bhqd,bhkd->bhqk", Q, K) / math.sqrt(d_k)
    scores = jnp.where(mask == 0, -1e9, scores)
    attn = jax.nn.softmax(scores, axis=-1)
    x = jnp.einsum("bhqk,bhkd->bhqd", attn, V)
    x = x.transpose(0, 2, 1, 3).reshape(B, Sq, D)
    return proj(x, w_o)


if __name__ == "__main__":
    # Small shapes consistent with the module: (batch, seq, d_model), h heads.
    B, S, d_model, h = 2, 8, 32, 4

    key = jax.random.PRNGKey(0)
    kq, kk_, kv_, k1, k2, k3, k4 = jax.random.split(key, 7)

    bound = 1.0 / math.sqrt(d_model)
    w_q = jax.random.uniform(k1, (d_model, d_model), jnp.float32, -bound, bound)
    w_k = jax.random.uniform(k2, (d_model, d_model), jnp.float32, -bound, bound)
    w_v = jax.random.uniform(k3, (d_model, d_model), jnp.float32, -bound, bound)
    w_o = jax.random.uniform(k4, (d_model, d_model), jnp.float32, -bound, bound)

    q = jax.random.normal(kq, (B, S, d_model), jnp.float32)
    k = jax.random.normal(kk_, (B, S, d_model), jnp.float32)
    v = jax.random.normal(kv_, (B, S, d_model), jnp.float32)

    # Causal mask in the usual (B, 1, S, S) layout (1 = keep, 0 = mask out)
    mask = jnp.broadcast_to(
        jnp.tril(jnp.ones((S, S), jnp.int32))[None, None], (B, 1, S, S)
    )

    # 1) exact f32 MXU path, distinct q/k/v (cross-attention style)
    out = multi_head_attention_block(q, k, v, mask, w_q, w_k, w_v, w_o,
                                     h=h, mxu_dtype=None)
    out = jax.block_until_ready(out)
    ref = reference(q, k, v, mask, w_q, w_k, w_v, w_o, h)
    assert out.shape == (B, S, d_model)
    assert jnp.allclose(out, ref, atol=2e-3, rtol=2e-3), \
        "f32 path mismatch vs reference"

    # 2) default bf16 MXU-operand path + fused-QKV self-attention (q is k is v)
    out2 = multi_head_attention_block(q, q, q, mask, w_q, w_k, w_v, w_o, h=h)
    out2 = jax.block_until_ready(out2)
    ref2 = reference(q, q, q, mask, w_q, w_k, w_v, w_o, h)
    assert out2.shape == (B, S, d_model)
    assert jnp.allclose(out2, ref2, atol=5e-2, rtol=5e-2), \
        "bf16 fused path mismatch vs reference"

    print("KERNEL_OK")
</pallas_src>

<mosaic_0001>
module attributes {stable_mosaic.version = 11 : i64} {
  func.func @_proj_heads_kernel(%arg0: i32, %arg1: i32, %arg2: i32, %arg3: memref<1x8x32xf32, #tpu.memory_space<vmem>>, %arg4: memref<1x32x8xf32, #tpu.memory_space<vmem>>, %arg5: memref<1x1x8x8xf32, #tpu.memory_space<vmem>>) attributes {dimension_semantics = [#tpu.dimension_semantics<parallel>, #tpu.dimension_semantics<parallel>, #tpu.dimension_semantics<parallel>], iteration_bounds = array<i64: 2, 1, 4>, scalar_prefetch = 0 : i64, scratch_operands = 0 : i64, tpu.core_type = #tpu.core_type<tc>, window_params = [{transform_indices = @transform_0, window_bounds = array<i64: 1, 8, 32>}, {transform_indices = @transform_1, window_bounds = array<i64: 1, 32, 8>}, {transform_indices = @transform_2, window_bounds = array<i64: 1, 1, 8, 8>}]} {
    %c0 = arith.constant 0 : index
    %c0_0 = arith.constant 0 : index
    %c0_1 = arith.constant 0 : index
    %0 = vector.load %arg3[%c0, %c0_0, %c0_1] : memref<1x8x32xf32, #tpu.memory_space<vmem>>, vector<1x8x32xf32>
    %1 = vector.shape_cast %0 : vector<1x8x32xf32> to vector<8x32xf32>
    %c0_2 = arith.constant 0 : index
    %c0_3 = arith.constant 0 : index
    %c0_4 = arith.constant 0 : index
    %2 = vector.load %arg4[%c0_2, %c0_3, %c0_4] : memref<1x32x8xf32, #tpu.memory_space<vmem>>, vector<1x32x8xf32>
    %3 = vector.shape_cast %2 : vector<1x32x8xf32> to vector<32x8xf32>
    %cst = arith.constant dense<0.000000e+00> : vector<8x8xf32>
    %4 = tpu.matmul %1, %3, %cst {dimension_numbers = #tpu.dot_dimension_numbers<[1], [0], [0], [1], [0, 0, 1, 1], [], []>} : vector<8x32xf32>, vector<32x8xf32>, vector<8x8xf32> -> vector<8x8xf32>
    %c0_5 = arith.constant 0 : index
    %c0_6 = arith.constant 0 : index
    %c0_7 = arith.constant 0 : index
    %c0_8 = arith.constant 0 : index
    %5 = vector.load %arg5[%c0_5, %c0_6, %c0_7, %c0_8] : memref<1x1x8x8xf32, #tpu.memory_space<vmem>>, vector<1x1x8x8xf32>
    %6 = vector.shape_cast %5 : vector<1x1x8x8xf32> to vector<8x8xf32>
    %7 = vector.shape_cast %4 : vector<8x8xf32> to vector<1x1x8x8xf32>
    tpu.vector_store %arg5[%c0_5, %c0_6, %c0_7, %c0_8], %7 {strides = array<i32>} : memref<1x1x8x8xf32, #tpu.memory_space<vmem>>, vector<1x1x8x8xf32>,
    return
  }
  func.func @transform_0(%arg0: i32, %arg1: i32, %arg2: i32) -> (i32, i32, i32) {
    %c0_i32 = arith.constant 0 : i32
    %c0_i32_0 = arith.constant 0 : i32
    return %arg0, %arg1, %c0_i32 : i32, i32, i32
  }
  func.func @transform_1(%arg0: i32, %arg1: i32, %arg2: i32) -> (i32, i32, i32) {
    %c0_i32 = arith.constant 0 : i32
    %c0_i32_0 = arith.constant 0 : i32
    %c0_i32_1 = arith.constant 0 : i32
    return %arg2, %c0_i32, %c0_i32_0 : i32, i32, i32
  }
  func.func @transform_2(%arg0: i32, %arg1: i32, %arg2: i32) -> (i32, i32, i32, i32) {
    %c0_i32 = arith.constant 0 : i32
    %c0_i32_0 = arith.constant 0 : i32
    return %arg0, %arg2, %arg1, %c0_i32 : i32, i32, i32, i32
  }
}

module attributes {stable_mosaic.version = 11 : i64} {
  func.func @_proj_merge_kernel(%arg0: i32, %arg1: i32, %arg2: i32, %arg3: memref<1x1x8x8xf32, #tpu.memory_space<vmem>>, %arg4: memref<1x8x32xf32, #tpu.memory_space<vmem>>, %arg5: memref<1x8x32xf32, #tpu.memory_space<vmem>>, %arg6: memref<8x32xf32, #tpu.memory_space<vmem>>) attributes {dimension_semantics = [#tpu.dimension_semantics<parallel>, #tpu.dimension_semantics<parallel>, #tpu.dimension_semantics<arbitrary>], iteration_bounds = array<i64: 2, 1, 4>, scalar_prefetch = 0 : i64, scratch_operands = 1 : i64, tpu.core_type = #tpu.core_type<tc>, window_params = [{transform_indices = @transform_0, window_bounds = array<i64: 1, 1, 8, 8>}, {transform_indices = @transform_1, window_bounds = array<i64: 1, 8, 32>}, {transform_indices = @transform_2, window_bounds = array<i64: 1, 8, 32>}]} {
    %c0_i32 = arith.constant 0 : i32
    %0 = arith.cmpi eq, %arg2, %c0_i32 : i32
    %1 = arith.extui %0 : i1 to i32
    %c0_i32_0 = arith.constant 0 : i32
    %2 = arith.cmpi ne, %1, %c0_i32_0 : i32
    scf.if %2 {
      %cst_12 = arith.constant 0.000000e+00 : f32
      %14 = vector.broadcast %cst_12 : f32 to vector<8x32xf32>
      %c0_13 = arith.constant 0 : index
      %c0_14 = arith.constant 0 : index
      %15 = vector.load %arg6[%c0_13, %c0_14] : memref<8x32xf32, #tpu.memory_space<vmem>>, vector<8x32xf32>
      tpu.vector_store %arg6[%c0_13, %c0_14], %14 {strides = array<i32>} : memref<8x32xf32, #tpu.memory_space<vmem>>, vector<8x32xf32>,
    } else {
    }
    %c0 = arith.constant 0 : index
    %c0_1 = arith.constant 0 : index
    %3 = vector.load %arg6[%c0, %c0_1] : memref<8x32xf32, #tpu.memory_space<vmem>>, vector<8x32xf32>
    %c0_2 = arith.constant 0 : index
    %c0_3 = arith.constant 0 : index
    %c0_4 = arith.constant 0 : index
    %c0_5 = arith.constant 0 : index
    %4 = vector.load %arg3[%c0_2, %c0_3, %c0_4, %c0_5] : memref<1x1x8x8xf32, #tpu.memory_space<vmem>>, vector<1x1x8x8xf32>
    %5 = vector.shape_cast %4 : vector<1x1x8x8xf32> to vector<8x8xf32>
    %c0_6 = arith.constant 0 : index
    %c0_7 = arith.constant 0 : index
    %c0_8 = arith.constant 0 : index
    %6 = vector.load %arg4[%c0_6, %c0_7, %c0_8] : memref<1x8x32xf32, #tpu.memory_space<vmem>>, vector<1x8x32xf32>
    %7 = vector.shape_cast %6 : vector<1x8x32xf32> to vector<8x32xf32>
    %cst = arith.constant dense<0.000000e+00> : vector<8x32xf32>
    %8 = tpu.matmul %5, %7, %cst {dimension_numbers = #tpu.dot_dimension_numbers<[1], [0], [0], [1], [0, 0, 1, 1], [], []>} : vector<8x8xf32>, vector<8x32xf32>, vector<8x32xf32> -> vector<8x32xf32>
    %9 = arith.addf %3, %8 : vector<8x32xf32>
    %c0_9 = arith.constant 0 : index
    %c0_10 = arith.constant 0 : index
    %10 = vector.load %arg6[%c0_9, %c0_10] : memref<8x32xf32, #tpu.memory_space<vmem>>, vector<8x32xf32>
    tpu.vector_store %arg6[%c0_9, %c0_10], %9 {strides = array<i32>} : memref<8x32xf32, #tpu.memory_space<vmem>>, vector<8x32xf32>,
    %c3_i32 = arith.constant 3 : i32
    %11 = arith.cmpi eq, %arg2, %c3_i32 : i32
    %12 = arith.extui %11 : i1 to i32
    %c0_i32_11 = arith.constant 0 : i32
    %13 = arith.cmpi ne, %12, %c0_i32_11 : i32
    scf.if %13 {
      %c0_12 = arith.constant 0 : index
      %c0_13 = arith.constant 0 : index
      %14 = vector.load %arg6[%c0_12, %c0_13] : memref<8x32xf32, #tpu.memory_space<vmem>>, vector<8x32xf32>
      %c0_14 = arith.constant 0 : index
      %c0_15 = arith.constant 0 : index
      %c0_16 = arith.constant 0 : index
      %15 = vector.load %arg5[%c0_14, %c0_15, %c0_16] : memref<1x8x32xf32, #tpu.memory_space<vmem>>, vector<1x8x32xf32>
      %16 = vector.shape_cast %15 : vector<1x8x32xf32> to vector<8x32xf32>
      %17 = vector.shape_cast %14 : vector<8x32xf32> to vector<1x8x32xf32>
      tpu.vector_store %arg5[%c0_14, %c0_15, %c0_16], %17 {strides = array<i32>} : memref<1x8x32xf32, #tpu.memory_space<vmem>>, vector<1x8x32xf32>,
    } else {
    }
    return
  }
  func.func @transform_0(%arg0: i32, %arg1: i32, %arg2: i32) -> (i32, i32, i32, i32) {
    %c0_i32 = arith.constant 0 : i32
    %c0_i32_0 = arith.constant 0 : i32
    return %arg0, %arg2, %arg1, %c0_i32 : i32, i32, i32, i32
  }
  func.func @transform_1(%arg0: i32, %arg1: i32, %arg2: i32) -> (i32, i32, i32) {
    %c0_i32 = arith.constant 0 : i32
    %c0_i32_0 = arith.constant 0 : i32
    %c0_i32_1 = arith.constant 0 : i32
    return %arg2, %c0_i32, %c0_i32_0 : i32, i32, i32
  }
  func.func @transform_2(%arg0: i32, %arg1: i32, %arg2: i32) -> (i32, i32, i32) {
    %c0_i32 = arith.constant 0 : i32
    %c0_i32_0 = arith.constant 0 : i32
    return %arg0, %arg1, %c0_i32 : i32, i32, i32
  }
}

module attributes {stable_mosaic.version = 11 : i64} {
  func.func @_mha_attention_kernel(%arg0: i32, %arg1: i32, %arg2: i32, %arg3: i32, %arg4: memref<1x4x8x8xf32, #tpu.memory_space<vmem>>, %arg5: memref<1x4x8x8xf32, #tpu.memory_space<vmem>>, %arg6: memref<1x4x8x8xf32, #tpu.memory_space<vmem>>, %arg7: memref<1x8x8xi8, #tpu.memory_space<vmem>>, %arg8: memref<1x4x8x8xf32, #tpu.memory_space<vmem>>, %arg9: memref<4x8x1xf32, #tpu.memory_space<vmem>>, %arg10: memref<4x8x1xf32, #tpu.memory_space<vmem>>, %arg11: memref<4x8x8xf32, #tpu.memory_space<vmem>>) attributes {dimension_semantics = [#tpu.dimension_semantics<parallel>, #tpu.dimension_semantics<parallel>, #tpu.dimension_semantics<parallel>, #tpu.dimension_semantics<arbitrary>], iteration_bounds = array<i64: 2, 1, 1, 1>, scalar_prefetch = 0 : i64, scratch_operands = 3 : i64, tpu.core_type = #tpu.core_type<tc>, window_params = [{transform_indices = @transform_0, window_bounds = array<i64: 1, 4, 8, 8>}, {transform_indices = @transform_1, window_bounds = array<i64: 1, 4, 8, 8>}, {transform_indices = @transform_2, window_bounds = array<i64: 1, 4, 8, 8>}, {transform_indices = @transform_3, window_bounds = array<i64: 1, 8, 8>}, {transform_indices = @transform_4, window_bounds = array<i64: 1, 4, 8, 8>}]} {
    %c0_i32 = arith.constant 0 : i32
    %0 = arith.cmpi eq, %arg3, %c0_i32 : i32
    %1 = arith.extui %0 : i1 to i32
    %c0_i32_0 = arith.constant 0 : i32
    %2 = arith.cmpi ne, %1, %c0_i32_0 : i32
    scf.if %2 {
      %cst_41 = arith.constant 0xFF800000 : f32
      %45 = vector.broadcast %cst_41 : f32 to vector<4x8x1xf32>
      %c0_42 = arith.constant 0 : index
      %c0_43 = arith.constant 0 : index
      %c0_44 = arith.constant 0 : index
      %46 = vector.load %arg9[%c0_42, %c0_43, %c0_44] : memref<4x8x1xf32, #tpu.memory_space<vmem>>, vector<4x8x1xf32>
      tpu.vector_store %arg9[%c0_42, %c0_43, %c0_44], %45 {strides = array<i32>} : memref<4x8x1xf32, #tpu.memory_space<vmem>>, vector<4x8x1xf32>,
      %cst_45 = arith.constant 0.000000e+00 : f32
      %47 = vector.broadcast %cst_45 : f32 to vector<4x8x1xf32>
      %c0_46 = arith.constant 0 : index
      %c0_47 = arith.constant 0 : index
      %c0_48 = arith.constant 0 : index
      %48 = vector.load %arg10[%c0_46, %c0_47, %c0_48] : memref<4x8x1xf32, #tpu.memory_space<vmem>>, vector<4x8x1xf32>
      tpu.vector_store %arg10[%c0_46, %c0_47, %c0_48], %47 {strides = array<i32>} : memref<4x8x1xf32, #tpu.memory_space<vmem>>, vector<4x8x1xf32>,
      %cst_49 = arith.constant 0.000000e+00 : f32
      %49 = vector.broadcast %cst_49 : f32 to vector<4x8x8xf32>
      %c0_50 = arith.constant 0 : index
      %c0_51 = arith.constant 0 : index
      %c0_52 = arith.constant 0 : index
      %50 = vector.load %arg11[%c0_50, %c0_51, %c0_52] : memref<4x8x8xf32, #tpu.memory_space<vmem>>, vector<4x8x8xf32>
      tpu.vector_store %arg11[%c0_50, %c0_51, %c0_52], %49 {strides = array<i32>} : memref<4x8x8xf32, #tpu.memory_space<vmem>>, vector<4x8x8xf32>,
    } else {
    }
    %c0 = arith.constant 0 : index
    %c0_1 = arith.constant 0 : index
    %c0_2 = arith.constant 0 : index
    %c0_3 = arith.constant 0 : index
    %3 = vector.load %arg4[%c0, %c0_1, %c0_2, %c0_3] : memref<1x4x8x8xf32, #tpu.memory_space<vmem>>, vector<1x4x8x8xf32>
    %4 = vector.shape_cast %3 : vector<1x4x8x8xf32> to vector<4x8x8xf32>
    %cst = arith.constant 0.353553385 : f32
    %5 = vector.broadcast %cst : f32 to vector<4x8x8xf32>
    %6 = arith.mulf %4, %5 : vector<4x8x8xf32>
    %c0_4 = arith.constant 0 : index
    %c0_5 = arith.constant 0 : index
    %c0_6 = arith.constant 0 : index
    %c0_7 = arith.constant 0 : index
    %7 = vector.load %arg5[%c0_4, %c0_5, %c0_6, %c0_7] : memref<1x4x8x8xf32, #tpu.memory_space<vmem>>, vector<1x4x8x8xf32>
    %8 = vector.shape_cast %7 : vector<1x4x8x8xf32> to vector<4x8x8xf32>
    "tpu.trace_start"() <{level = 10 : i32, message = "gqd,gkd->gqk"}> : () -> ()
    %cst_8 = arith.constant dense<0.000000e+00> : vector<4x8x8xf32>
    %9 = tpu.matmul %6, %8, %cst_8 {dimension_numbers = #tpu.dot_dimension_numbers<[2], [2], [1], [1], [0, 0, 0, 1, 1, 1], [0], [0]>} : vector<4x8x8xf32>, vector<4x8x8xf32>, vector<4x8x8xf32> -> vector<4x8x8xf32>
    "tpu.trace_stop"() : () -> ()
    %c0_9 = arith.constant 0 : index
    %c0_10 = arith.constant 0 : index
    %c0_11 = arith.constant 0 : index
    %10 = vector.load %arg7[%c0_9, %c0_10, %c0_11] : memref<1x8x8xi8, #tpu.memory_space<vmem>>, vector<1x8x8xi8>
    %11 = arith.sitofp %10 : vector<1x8x8xi8> to vector<1x8x8xf32>
    %cst_12 = arith.constant 0.000000e+00 : f32
    %12 = vector.broadcast %cst_12 : f32 to vector<1x8x8xf32>
    %13 = arith.cmpf oeq, %11, %12 : vector<1x8x8xf32>
    %cst_13 = arith.constant -1.000000e+09 : f32
    %14 = vector.shape_cast %13 : vector<1x8x8xi1> to vector<1x8x8xi1>
    %15 = vector.broadcast %14 : vector<1x8x8xi1> to vector<4x8x8xi1>
    %16 = vector.broadcast %cst_13 : f32 to vector<4x8x8xf32>
    %17 = arith.select %15, %16, %9 : vector<4x8x8xi1>, vector<4x8x8xf32>
    %c0_14 = arith.constant 0 : index
    %c0_15 = arith.constant 0 : index
    %c0_16 = arith.constant 0 : index
    %18 = vector.load %arg9[%c0_14, %c0_15, %c0_16] : memref<4x8x1xf32, #tpu.memory_space<vmem>>, vector<4x8x1xf32>
    %cst_17 = arith.constant dense<0xFF800000> : vector<4x8xf32>
    %19 = vector.multi_reduction <maximumf>, %17, %cst_17 [2] : vector<4x8x8xf32> to vector<4x8xf32>
    %20 = vector.shape_cast %19 : vector<4x8xf32> to vector<4x8x1xf32>
    %21 = arith.maximumf %18, %20 : vector<4x8x1xf32>
    %22 = arith.subf %18, %21 : vector<4x8x1xf32>
    %23 = math.exp %22 : vector<4x8x1xf32>
    %24 = vector.broadcast %21 : vector<4x8x1xf32> to vector<4x8x8xf32>
    %25 = arith.subf %17, %24 : vector<4x8x8xf32>
    %26 = math.exp %25 : vector<4x8x8xf32>
    %c0_18 = arith.constant 0 : index
    %c0_19 = arith.constant 0 : index
    %c0_20 = arith.constant 0 : index
    %27 = vector.load %arg10[%c0_18, %c0_19, %c0_20] : memref<4x8x1xf32, #tpu.memory_space<vmem>>, vector<4x8x1xf32>
    %28 = arith.mulf %23, %27 : vector<4x8x1xf32>
    %cst_21 = arith.constant dense<0.000000e+00> : vector<4x8xf32>
    %29 = vector.multi_reduction <add>, %26, %cst_21 [2] : vector<4x8x8xf32> to vector<4x8xf32>
    %30 = vector.shape_cast %29 : vector<4x8xf32> to vector<4x8x1xf32>
    %31 = arith.addf %28, %30 : vector<4x8x1xf32>
    %c0_22 = arith.constant 0 : index
    %c0_23 = arith.constant 0 : index
    %c0_24 = arith.constant 0 : index
    %32 = vector.load %arg10[%c0_22, %c0_23, %c0_24] : memref<4x8x1xf32, #tpu.memory_space<vmem>>, vector<4x8x1xf32>
    tpu.vector_store %arg10[%c0_22, %c0_23, %c0_24], %31 {strides = array<i32>} : memref<4x8x1xf32, #tpu.memory_space<vmem>>, vector<4x8x1xf32>,
    %c0_25 = arith.constant 0 : index
    %c0_26 = arith.constant 0 : index
    %c0_27 = arith.constant 0 : index
    %33 = vector.load %arg11[%c0_25, %c0_26, %c0_27] : memref<4x8x8xf32, #tpu.memory_space<vmem>>, vector<4x8x8xf32>
    %34 = vector.broadcast %23 : vector<4x8x1xf32> to vector<4x8x8xf32>
    %35 = arith.mulf %34, %33 : vector<4x8x8xf32>
    %c0_28 = arith.constant 0 : index
    %c0_29 = arith.constant 0 : index
    %c0_30 = arith.constant 0 : index
    %c0_31 = arith.constant 0 : index
    %36 = vector.load %arg6[%c0_28, %c0_29, %c0_30, %c0_31] : memref<1x4x8x8xf32, #tpu.memory_space<vmem>>, vector<1x4x8x8xf32>
    %37 = vector.shape_cast %36 : vector<1x4x8x8xf32> to vector<4x8x8xf32>
    "tpu.trace_start"() <{level = 10 : i32, message = "gqk,gkd->gqd"}> : () -> ()
    %cst_32 = arith.constant dense<0.000000e+00> : vector<4x8x8xf32>
    %38 = tpu.matmul %26, %37, %cst_32 {dimension_numbers = #tpu.dot_dimension_numbers<[2], [1], [1], [2], [0, 0, 0, 1, 1, 2], [0], [0]>} : vector<4x8x8xf32>, vector<4x8x8xf32>, vector<4x8x8xf32> -> vector<4x8x8xf32>
    "tpu.trace_stop"() : () -> ()
    %39 = arith.addf %35, %38 : vector<4x8x8xf32>
    %c0_33 = arith.constant 0 : index
    %c0_34 = arith.constant 0 : index
    %c0_35 = arith.constant 0 : index
    %40 = vector.load %arg11[%c0_33, %c0_34, %c0_35] : memref<4x8x8xf32, #tpu.memory_space<vmem>>, vector<4x8x8xf32>
    tpu.vector_store %arg11[%c0_33, %c0_34, %c0_35], %39 {strides = array<i32>} : memref<4x8x8xf32, #tpu.memory_space<vmem>>, vector<4x8x8xf32>,
    %c0_36 = arith.constant 0 : index
    %c0_37 = arith.constant 0 : index
    %c0_38 = arith.constant 0 : index
    %41 = vector.load %arg9[%c0_36, %c0_37, %c0_38] : memref<4x8x1xf32, #tpu.memory_space<vmem>>, vector<4x8x1xf32>
    tpu.vector_store %arg9[%c0_36, %c0_37, %c0_38], %21 {strides = array<i32>} : memref<4x8x1xf32, #tpu.memory_space<vmem>>, vector<4x8x1xf32>,
    %c0_i32_39 = arith.constant 0 : i32
    %42 = arith.cmpi eq, %arg3, %c0_i32_39 : i32
    %43 = arith.extui %42 : i1 to i32
    %c0_i32_40 = arith.constant 0 : i32
    %44 = arith.cmpi ne, %43, %c0_i32_40 : i32
    scf.if %44 {
      %c0_41 = arith.constant 0 : index
      %c0_42 = arith.constant 0 : index
      %c0_43 = arith.constant 0 : index
      %45 = vector.load %arg10[%c0_41, %c0_42, %c0_43] : memref<4x8x1xf32, #tpu.memory_space<vmem>>, vector<4x8x1xf32>
      %46 = tpu.reciprocal %45 {approx = true} : vector<4x8x1xf32> -> vector<4x8x1xf32>
      %c0_44 = arith.constant 0 : index
      %c0_45 = arith.constant 0 : index
      %c0_46 = arith.constant 0 : index
      %47 = vector.load %arg11[%c0_44, %c0_45, %c0_46] : memref<4x8x8xf32, #tpu.memory_space<vmem>>, vector<4x8x8xf32>
      %48 = vector.broadcast %46 : vector<4x8x1xf32> to vector<4x8x8xf32>
      %49 = arith.mulf %47, %48 : vector<4x8x8xf32>
      %c0_47 = arith.constant 0 : index
      %c0_48 = arith.constant 0 : index
      %c0_49 = arith.constant 0 : index
      %c0_50 = arith.constant 0 : index
      %50 = vector.load %arg8[%c0_47, %c0_48, %c0_49, %c0_50] : memref<1x4x8x8xf32, #tpu.memory_space<vmem>>, vector<1x4x8x8xf32>
      %51 = vector.shape_cast %50 : vector<1x4x8x8xf32> to vector<4x8x8xf32>
      %52 = vector.shape_cast %49 : vector<4x8x8xf32> to vector<1x4x8x8xf32>
      tpu.vector_store %arg8[%c0_47, %c0_48, %c0_49, %c0_50], %52 {strides = array<i32>} : memref<1x4x8x8xf32, #tpu.memory_space<vmem>>, vector<1x4x8x8xf32>,
    } else {
    }
    return
  }
  func.func @transform_0(%arg0: i32, %arg1: i32, %arg2: i32, %arg3: i32) -> (i32, i32, i32, i32) {
    %c0_i32 = arith.constant 0 : i32
    %0 = arith.addi %arg1, %c0_i32 : i32
    %c0_i32_0 = arith.constant 0 : i32
    %c0_i32_1 = arith.constant 0 : i32
    return %arg0, %0, %arg2, %c0_i32_0 : i32, i32, i32, i32
  }
  func.func @transform_1(%arg0: i32, %arg1: i32, %arg2: i32, %arg3: i32) -> (i32, i32, i32, i32) {
    %c0_i32 = arith.constant 0 : i32
    %0 = arith.addi %arg1, %c0_i32 : i32
    %c0_i32_0 = arith.constant 0 : i32
    %c0_i32_1 = arith.constant 0 : i32
    return %arg0, %0, %arg3, %c0_i32_0 : i32, i32, i32, i32
  }
  func.func @transform_2(%arg0: i32, %arg1: i32, %arg2: i32, %arg3: i32) -> (i32, i32, i32, i32) {
    %c0_i32 = arith.constant 0 : i32
    %0 = arith.addi %arg1, %c0_i32 : i32
    %c0_i32_0 = arith.constant 0 : i32
    %c0_i32_1 = arith.constant 0 : i32
    return %arg0, %0, %arg3, %c0_i32_0 : i32, i32, i32, i32
  }
  func.func @transform_3(%arg0: i32, %arg1: i32, %arg2: i32, %arg3: i32) -> (i32, i32, i32) {
    %c0_i32 = arith.constant 0 : i32
    return %arg0, %arg2, %arg3 : i32, i32, i32
  }
  func.func @transform_4(%arg0: i32, %arg1: i32, %arg2: i32, %arg3: i32) -> (i32, i32, i32, i32) {
    %c0_i32 = arith.constant 0 : i32
    %c0_i32_0 = arith.constant 0 : i32
    return %arg0, %arg1, %arg2, %c0_i32 : i32, i32, i32, i32
  }
}

</mosaic_0001>

<bundles_post_ra>
// kernel: _mha_impl.5
= control target key start
LH: loop header
LB: loop body
LE: loop exit
PB: predicated region body
PF: predicated region fallthrough
CT: control target
= control target key end

     0   :  { %s525_s9 = smov 0   ;;  %s527_s10 = smov 0   ;;  %s579_s0 = inlined_call_operand.vmem [shape: f32[2,8,32], index: 0, kind: input, shape index: {}]   ;;  %s580_s1 = inlined_call_operand.vmem [shape: f32[4,32,8], index: 1, kind: input, shape index: {}]   ;;  %s581_s2 = inlined_call_operand.vmem [shape: f32[2,4,8,8], index: 2, kind: output, shape index: {}]  }
   0x1   :  { %s529_s11 = smov 0   ;;  %s531_s12 = smov 0  }
   0x2   :  { %s533_s13 = smov 0  }
   0x3 LB: > { %s24_s14 = sadd.s32 1, %s498_s11  ;;  %s31_s15 = sadd.s32 1, %s502_s12  ;;  %s506_s13 = sphi %s533_s13, %s12_s13   ;;  %s502_s12 = sphi %s531_s12, %s585_s12   ;;  %s498_s11 = sphi %s529_s11, %s584_s11   ;;  %s494_s10 = sphi %s527_s10, %s583_s10   ;;  %s490_s9 = sphi %s525_s9, %s582_s9  }
   0x4   : > { %p25_p0 = scmp.ge.s32.totalorder %s24_s14, 4  ;;  %p400_p1 = scmp.ge.s32.totalorder %s506_s13, 1 }
   0x5   : > { %p149_p2 = scmp.lt.s32.totalorder %s506_s13, 9 }
   0x6   : > { %s587_s14 = smov (%p25_p0, %s24_s14), 0  ;;  %s589_s15 = smov (!%p25_p0, %s31_s15), %s502_s12 }
   0x7   : > { %p150_p3 = pnand %p400_p1, %p149_p2  ;;  %p33_p4 = scmp.ge.s32.totalorder %s589_s15, 2 }
   0x8   : > { %p191_p5 = scmp.lt.s32.totalorder (!%p150_p3), %s490_s9, 3  ;;  %p184_p6 = scmp.lt.s32.totalorder (!%p150_p3), %s494_s10, 1 }
   0x9   : > { %s591_s15 = smov (%p33_p4, %s589_s15), 0  ;;  %153 = sbr.rel (%p150_p3) target bundleno = 220 (0xdc), region = 28 }
   0xe   : > { %v508_v0 = vmov 0.0   ;;  %vm509_vm0 = vmmov 0   ;;  %s593_s9 = smov (!%p191_p5, %s490_s9), 3  ;;  %s595_s10 = smov (!%p184_p6, %s494_s10), 1  ;;  %vm212_vm1 = vcmask 261120   ;;  %vm286_vm2 = vcmask 64512  }
   0xf   : > { %415 = vmatprep.subr.mxu0 %v508_v0  ;;  %423 = vmatprep.mubr.msk.f32.mxu0 %vm509_vm0, %v508_v0  ;;  %s409_s16 = sshll.u32 %s593_s9, 5  ;;  %s401_s20 = sshll.u32 %s595_s10, 3 }
  0x10   : > { %s195_s19 = scalar_lea.vmem %s580_s1, %s409_s16  ;;  %s404_s21 = sshll.u32 %s595_s10, 2 }
  0x11   : > { %v211_v1 = vld [vmem:[%s195_s19 + $0x18] sm:$0xff]  ;;  %v210_v2 = vld [vmem:[%s195_s19 + $0x10] sm:$0xff]  ;;  %s204_s22 = sadd.s32 %s404_s21, %s593_s9  ;;  %v209_v3 = vld [vmem:[%s195_s19 + $0x8] sm:$0xff]  ;;  %s190_s25 = scalar_lea.vmem %s579_s0, %s401_s20 }
  0x12   : > { %416 = vmatpush3.msra.mxu0 %v211_v1  ;;  %v208_v4 = vld [vmem:[%s195_s19] sm:$0xff]  ;;  %s405_s26 = sshll.u32 %s204_s22, 3 }
  0x13   : > { %417 = vmatprep.subr.mxu0 %v508_v0  ;;  %v207_v5 = vld [vmem:[%s190_s25] sm:$0xff]  ;;  %s206_s29 = scalar_lea.vmem %s581_s2, %s405_s26 }
  0x14   : > { %418 = vmatpush3.msra.mxu0 %v210_v2 }
  0x15   : > { %419 = vmatprep.subr.mxu0 %v508_v0 }
  0x16   : > { %420 = vmatpush3.msra.mxu0 %v209_v3 }
  0x17   : > { %421 = vmatprep.subr.mxu0 %v508_v0 }
  0x18   : > { %422 = vmatpush3.msra.mxu0 %v208_v4 }
  0x19   : > { %424 = vmatmul.mubr.msk.f32.vlgmr.msra.gmra.mxu0 %vm212_vm1, %v207_v5 }
  0xd9   : > { %v282_v6 = vpop.f32.mrf.mxu0 }
  0xda   : > { %287 = vst.msk [vmem:[%s206_s29] sm:$0xff] %vm286_vm2, %v282_v6 }
  0xdb   : > { %v425_v7 = vpop.f32.mrf.mxu0 }
  0xdc PF: > { %s12_s13 = sadd.s32 1, %s506_s13   ;;  %s582_s9 = smov %s498_s11 }
  0xdd   : > { %p9_p7 = scmp.ge.s32.totalorder %s12_s13, 10   ;;  %s583_s10 = smov %s502_s12 }
  0xde   : > { %s584_s11 = smov %s587_s14  ;;  %s585_s12 = smov %s591_s15 }
  0xdf   :  { %11 = sbr.rel (!%p9_p7) target bundleno = 3 (0x3), region = 61 }

// kernel: _mha_impl.9
= control target key start
LH: loop header
LB: loop body
LE: loop exit
PB: predicated region body
PF: predicated region fallthrough
CT: control target
= control target key end

     0   :  { %7 = vsyncpa [#allocation4], 0  ;;  %s751_s0 = inlined_call_operand.vmem [shape: f32[2,4,8,8], index: 0, kind: input, shape index: {}]   ;;  %s752_s1 = inlined_call_operand.vmem [shape: f32[4,8,32], index: 1, kind: input, shape index: {}]   ;;  %s753_s2 = inlined_call_operand.hbm [shape: f32[2,8,32], index: 2, kind: output, shape index: {}]  }
   0x1   :  { %9 = vsyncpa [#allocation4 + $0x1], 0  ;;  %s614_s9 = smov 0   ;;  %s616_s10 = smov 0  }
   0x2   :  { %s618_s11 = smov 0   ;;  %s620_s12 = smov 0  }
   0x3   :  { %s622_s13 = smov 0   ;;  %s624_s14 = smov 0  }
   0x4   :  { %s626_s15 = smov 0   ;;  %s628_s16 = smov 0  }
   0x5 LB: > { %s404_s17 = sadd.s32 4294967295, %s593_s16   ;;  %s405_s18 = sadd.s32 4294967294, %s593_s16   ;;  %s593_s16 = sphi %s628_s16, %s15_s16   ;;  %s589_s15 = sphi %s626_s15, %s762_s15   ;;  %s585_s14 = sphi %s624_s14, %s761_s14   ;;  %s581_s13 = sphi %s622_s13, %s760_s13   ;;  %s577_s12 = sphi %s620_s12, %s759_s12   ;;  %s573_s11 = sphi %s618_s11, %s758_s11   ;;  %s569_s10 = sphi %s616_s10, %s757_s10   ;;  %s565_s9 = sphi %s614_s9, %s756_s9  }
   0x6   : > { %s27_s19 = sadd.s32 1, %s585_s14  ;;  %s34_s20 = sadd.s32 1, %s589_s15 }
   0x7   : > { %p28_p0 = scmp.ge.s32.totalorder %s27_s19, 4  ;;  %p109_p1 = scmp.ne.s32.totalorder %s573_s11, %s569_s10 }
   0x8   : > { %p110_p2 = scmp.eq.s32.totalorder %s404_s17, 7  ;;  %p115_p4 = scmp.ne.s32.totalorder %s569_s10, %s565_s9 }
   0x9   : > { %s764_s19 = smov (%p28_p0, %s27_s19), 0  ;;  %s766_s20 = smov (!%p28_p0, %s34_s20), %s589_s15 }
   0xa   : > { %p663_p3 = por %p110_p2, %p109_p1  ;;  %p36_p5 = scmp.ge.s32.totalorder %s766_s20, 2 }
   0xb   : > { %p116_p6 = scmp.eq.s32.totalorder %s405_s18, 7  ;;  %p408_p7 = scmp.ge.s32.totalorder %s593_s16, 1 }
   0xc   : > { %p155_p8 = scmp.lt.s32.totalorder %s593_s16, 9  ;;  %s768_s20 = smov (%p36_p5, %s766_s20), 0 }
   0xd   : > { %p673_p9 = por %p116_p6, %p115_p4  ;;  %s94_s23 = ssub.s32 %s589_s15, %s768_s20 }
   0xe   : > { %p156_p10 = pnand %p408_p7, %p155_p8  ;;  %s99_s24 = sadd.s32 1, %s573_s11 }
   0xf   : > { %p97_p11 = scmp.eq.s32.totalorder %s94_s23, 0  ;;  %s184_s26 = sand.u32 (!%p156_p10), 1, %s569_s10  }
  0x10   : > { %159 = sbr.rel (%p156_p10) target bundleno = 260 (0x104), region = 28  ;;  %p187_p12 = scmp.lt.s32.totalorder (!%p156_p10), %s581_s13, 1 }
  0x11   : > { %s681_s25 = scalar_select %p97_p11, %s573_s11, %s99_s24  }
  0x12   : > { %s687_s27 = sshll.u32 (!%p156_p10), %s184_s26, 3  ;;  %p189_p13 = scmp.lt.s32.totalorder (!%p156_p10), %s577_s12, 3 }
  0x13   : > { %s186_s24 = scalar_lea.vmem (!%p156_p10), [#allocation3], %s687_s27  ;;  %p413_p0 = scmp.ne.s32.totalorder (!%p156_p10), %s577_s12, 0 }
  0x15   : > { %s188_s28 = scalar_select %p187_p12, %s581_s13, 1 }
  0x16   : > { %s190_s29 = scalar_select %p189_p13, %s577_s12, 3 }
  0x17   : > { %s410_s30 = sshll.u32 %s188_s28, 2  ;;  %205 = sbr.rel (%p413_p0) target bundleno = 30 (0x1e), region = 32 }
  0x18   : > { %s195_s3 = sadd.s32 %s410_s30, %s190_s29  ;;  %s412_s4 = sshll.u32 %s190_s29, 3 }
  0x19   : > { %s411_s5 = sshll.u32 %s195_s3, 3  ;;  %s201_s8 = scalar_lea.vmem %s752_s1, %s412_s4 }
  0x1a   : > { %s197_s23 = scalar_lea.vmem %s751_s0, %s411_s5 }
  0x1c   : > { %vm206_vm0 = vcmask 261120   ;;  %v595_v0 = vmov 0.0  }
  0x1d   : > { %207 = vst.msk [vmem:[#allocation2] sm:$0xff] %vm206_vm0, %v595_v0 }
  0x1e PF: > { %v210_v1 = vld [vmem:[%s201_s8] sm:$0xff]  ;;  %vm211_vm1 = vcmask 64512   ;;  %v596_v3 = vmov 0.0   ;;  %vm597_vm2 = vmmov 0   ;;  %vm286_vm3 = vcmask 261120   ;;  %p415_p1 = scmp.ne.s32.totalorder %s577_s12, 3 }
  0x1f   : > { %v209_v2 = vld [vmem:[%s197_s23] sm:$0xff]  ;;  %422 = vmatprep.subr.mxu0 %v596_v3  ;;  %424 = vmatprep.mubr.msk.f32.mxu0 %vm597_vm2, %v596_v3 }
  0x20   : > { %423 = vmatpush3.msra.mxu0 %v210_v1 }
  0x21   : > { %425 = vmatmul.mubr.msk.f32.vlgmr.msra.gmra.mxu0 %vm211_vm1, %v209_v2 }
  0x24   : > { %v208_v4 = vld [vmem:[#allocation2] sm:$0xff] }
  0xe0   : > { %291 = sbr.rel (%p415_p1) target bundleno = 237 (0xed), region = 36 }
  0xe1   : > { %v281_v5 = vpop.f32.mrf.mxu0 }
  0xe2   : > { %v285_v6 = vadd.f32 %v281_v5, %v208_v4 }
  0xe3   : > { %v426_v7 = vpop.f32.mrf.mxu0 }
  0xe4   : > { %287 = vst.msk [vmem:[#allocation2] sm:$0xff] %vm286_vm3, %v285_v6 }
  0xeb   : > { %v292_v8 = vld [vmem:[#allocation2] sm:$0xff] }
  0xec   : > { %293 = vst.msk [vmem:[%s186_s24] sm:$0xff] %vm286_vm3, %v292_v8 }
  0xed PF: > { %s417_s28 = sshll.u32 %s581_s13, 7  ;;  %s309_s4 = sshll.u32 %s186_s24, 4  ;;  %s310_s4 = int_to_ptr.vmem [resolvable:$true] %s309_s4 }
  0xee   : > { %s307_s3 = scalar_lea.hbm %s753_s2, %s417_s28  ;;  %s295_s12 = scalar_lea.sflag [#allocation4], %s184_s26 }
  0xef   : > { %s501_s5 = scalar_lea.vmem %s310_s4, 128  ;;  %s598_s6 = smov [#allocation3]  }
  0xf0   : > { %p502_p2 = scmp.ne.s32.totalorder %s310_s4, %s501_s5  ;;  %s505_s7 = sshll.u32 %s598_s6, 4  ;;  %s506_s7 = int_to_ptr.vmem [resolvable:$false] %s505_s7 }
  0xf1   : > { %s507_s8 = scalar_lea.vmem %s506_s7, 256  ;;  %p508_p6 = scmp.lt.s32.totalorder %s310_s4, %s506_s7 }
  0xf2   : > { %p503_p4 = pnand %p502_p2, %p663_p3  ;;  %p509_p7 = scmp.lt.s32.totalorder %s507_s8, %s501_s5 }
  0xf4   : > { %p504_p5 = pneg %p503_p4  ;;  %p510_p8 = por %p509_p7, %p508_p6 }
  0xf6   : > { %p511_p10 = pnand %p510_p8, %p504_p5 }
  0xf8   : > { %514 = shalt.err (!%p511_p10)
}
  0xf9   : > { %s515_s13 = scalar_lea.hbm %s307_s3, 128  ;;  %s519_s17 = scalar_lea.hbm %s753_s2, 256 }
  0xfa   : > { %p516_p11 = scmp.ne.s32.totalorder %s307_s3, %s515_s13  ;;  %p520_p0 = scmp.lt.s32.totalorder %s307_s3, %s753_s2 }
  0xfb   : > { %p521_p1 = scmp.lt.s32.totalorder %s519_s17, %s515_s13 }
  0xfc   : > { %p517_p12 = pnand %p516_p11, %p663_p3 }
  0xfd   : > { %p522_p2 = por %p521_p1, %p520_p0 }
  0xfe   : > { %p518_p13 = pneg %p517_p12 }
 0x100   : > { %p523_p4 = pnand %p522_p2, %p518_p13 }
 0x102   : > { %526 = shalt.err (!%p523_p4)
}
 0x103   : > { %427 = dma.vmem_to_hbm [thread:$0]  (%p663_p3), %s310_s4, 128, %s307_s3, %s295_s12  }
 0x104 PF: > { %p433_p5 = scmp.ge.s32.totalorder %s593_s16, 2  ;;  %s321_s24 = sand.u32 1, %s565_s9  }
 0x105   : > { %s322_s28 = scalar_lea.sflag [#allocation4], %s321_s24 }
 0x106   : > { %p430_p6 = pnand %p433_p5, %p673_p9 }
 0x108   : > { %p431_p7 = pneg %p430_p6 }
 0x10a   : > { %560 = dma.done.wait (%p431_p7), %s322_s28, 128  }
 0x10b   : > { %562 = vsyncadd (%p431_p7), %s322_s28, 4294967168  ;;  %s15_s16 = sadd.s32 1, %s593_s16   ;;  %s756_s9 = smov %s569_s10 }
 0x10c   : > { %p12_p8 = scmp.ge.s32.totalorder %s15_s16, 10   ;;  %s757_s10 = smov %s573_s11 }
 0x10d   : > { %s758_s11 = smov %s681_s25  ;;  %s759_s12 = smov %s585_s14 }
 0x10e   : > { %s760_s13 = smov %s589_s15  ;;  %s761_s14 = smov %s764_s19 }
 0x10f   : > { %s762_s15 = smov %s768_s20  ;;  %14 = sbr.rel (!%p12_p8) target bundleno = 5 (0x5), region = 74 }
 0x114   :  { %327 = vsyncpa [#allocation4], 1 }
 0x115   :  { %329 = vsyncpa [#allocation4 + $0x1], 1 }

// kernel: _mha_impl.8
= control target key start
LH: loop header
LB: loop body
LE: loop exit
PB: predicated region body
PF: predicated region fallthrough
CT: control target
= control target key end

     0   :  { %s1581_s15 = smov 0   ;;  %s1583_s16 = smov 0   ;;  %s1736_s0 = inlined_call_operand.vmem [shape: f32[2,4,8,8], index: 0, kind: input, shape index: {}]   ;;  %s1737_s1 = inlined_call_operand.vmem [shape: f32[2,4,8,8], index: 1, kind: input, shape index: {}]   ;;  %s1738_s2 = inlined_call_operand.vmem [shape: f32[2,4,8,8], index: 2, kind: input, shape index: {}]   ;;  %s1739_s3 = inlined_call_operand.vmem [shape: s8[2,8,8], index: 3, kind: input, shape index: {}]   ;;  %s1740_s4 = inlined_call_operand.vmem [shape: f32[2,4,8,8], index: 4, kind: output, shape index: {}]  }
   0x1   :  { %s1585_s17 = smov 0  }
   0x2 LB: > { %s40_s18 = sadd.s32 1, %s1546_s16  ;;  %p1390_p0 = scmp.ge.s32.totalorder %s1550_s17, 1  ;;  %s1550_s17 = sphi %s1585_s17, %s14_s17   ;;  %s1546_s16 = sphi %s1583_s16, %s1742_s16   ;;  %s1542_s15 = sphi %s1581_s15, %s1741_s15  }
   0x3   : > { %p42_p1 = scmp.ge.s32.totalorder %s40_s18, 2  ;;  %p267_p2 = scmp.lt.s32.totalorder %s1550_s17, 3 }
   0x5   : > { %s1744_s18 = smov (%p42_p1, %s40_s18), 0  ;;  %p268_p3 = pnand %p1390_p0, %p267_p2 }
   0x6   : > { %p342_p4 = scmp.lt.s32.totalorder (!%p268_p3), %s1542_s15, 1 }
   0x7   : > { %271 = sbr.rel (%p268_p3) target bundleno = 798 (0x31e), region = 36 }
   0xc   : > { %vm416_vm0 = vcmask 64512   ;;  %v1552_v0 = vmov 0.0   ;;  %s1746_s15 = smov (!%p342_p4, %s1542_s15), 1  ;;  %vm1553_vm1 = vmmov 0   ;;  %vm407_vm2 = vcmask 7168  }
   0xd   : > { %1434 = vmatprep.subr.mxu0 %v1552_v0  ;;  %417 = vst.msk [vmem:[#allocation4] sm:$0xff] %vm416_vm0, %v1552_v0  ;;  %418 = vst.msk [vmem:[#allocation4 + $0x8] sm:$0xff] %vm416_vm0, %v1552_v0  ;;  %1439 = vmatprep.subr.mxu1 %v1552_v0  ;;  %s1616_s19 = sshll.u32 %s1746_s15, 5  ;;  %v1554_v13 = vmov -inf   ;;  %s1397_s26 = sshll.u32 %s1746_s15, 1  ;;  %v1555_v33 = vmov 0  }
   0xe   : > { %419 = vst.msk [vmem:[#allocation4 + $0x10] sm:$0xff] %vm416_vm0, %v1552_v0  ;;  %420 = vst.msk [vmem:[#allocation4 + $0x18] sm:$0xff] %vm416_vm0, %v1552_v0  ;;  %1436 = vmatprep.mubr.msk.f32.mxu0 %vm1553_vm1, %v1552_v0  ;;  %1441 = vmatprep.mubr.msk.f32.mxu1 %vm1553_vm1, %v1552_v0  ;;  %s365_s22 = scalar_lea.vmem %s1737_s1, %s1616_s19  ;;  %s352_s25 = scalar_lea.vmem %s1736_s0, %s1616_s19 }
   0xf   : > { %v429_v1 = vld [vmem:[%s365_s22] sm:$0xff]  ;;  %v430_v2 = vld [vmem:[%s365_s22 + $0x8] sm:$0xff]  ;;  %v423_v6 = vld [vmem:[%s352_s25 + $0x10] sm:$0xff]  ;;  %408 = vst.msk [vmem:[#allocation2] sm:$0xff] %vm407_vm2, %v1554_v13  ;;  %s389_s29 = scalar_lea.vmem %s1739_s3, %s1397_s26  ;;  %1502 = vset.pattern.permute.xlu0 %v1555_v33  ;;  %1503 = vset.pattern.permute.xlu1 %v1555_v33  ;;  %s1691_s6 = scalar_lea.vmem %s1738_s2, %s1616_s19 }
  0x10   : > { %v421_v3 = vld [vmem:[%s352_s25] sm:$0xff]  ;;  %1435 = vmatpush3.xpose.msk.msra.mxu0 %vm416_vm0, %v429_v1  ;;  %1440 = vmatpush3.xpose.msk.msra.mxu1 %vm416_vm0, %v430_v2  ;;  %v422_v5 = vld [vmem:[%s352_s25 + $0x8] sm:$0xff]  ;;  %v431_v8 = vld [vmem:[%s365_s22 + $0x10] sm:$0xff]  ;;  %v427_v11 = vmul.f32 0.35355338, %v423_v6  ;;  %409 = vst.msk [vmem:[#allocation2 + $0x8] sm:$0xff] %vm407_vm2, %v1554_v13  ;;  %s401_s9 = scalar_lea.vmem %s1740_s4, %s1616_s19 }
  0x11   : > { %v425_v4 = vmul.f32 0.35355338, %v421_v3  ;;  %v426_v7 = vmul.f32 0.35355338, %v422_v5  ;;  %1444 = vmatprep.subr.mxu0 %v1552_v0  ;;  %1449 = vmatprep.subr.mxu1 %v1552_v0  ;;  %v424_v9 = vld [vmem:[%s352_s25 + $0x18] sm:$0xff]  ;;  %410 = vst.msk [vmem:[#allocation2 + $0x10] sm:$0xff] %vm407_vm2, %v1554_v13 }
  0x12   : > { %v432_v10 = vld [vmem:[%s365_s22 + $0x18] sm:$0xff]  ;;  %v428_v12 = vmul.f32 0.35355338, %v424_v9  ;;  %411 = vst.msk [vmem:[#allocation2 + $0x18] sm:$0xff] %vm407_vm2, %v1554_v13  ;;  %412 = vst.msk [vmem:[#allocation3] sm:$0xff] %vm407_vm2, %v1552_v0  ;;  %v869_v50 = vld [vmem:[%s1691_s6] sm:$0xff] }
  0x13   : > { %1437 = vmatmul.mubr.msk.f32.vlgmr.msra.gmra.mxu0 %vm416_vm0, %v425_v4  ;;  %1442 = vmatmul.mubr.msk.f32.vlgmr.msra.gmra.mxu1 %vm416_vm0, %v426_v7  ;;  %413 = vst.msk [vmem:[#allocation3 + $0x8] sm:$0xff] %vm407_vm2, %v1552_v0  ;;  %414 = vst.msk [vmem:[#allocation3 + $0x10] sm:$0xff] %vm407_vm2, %v1552_v0  ;;  %v738_v14 = vld [vmem:[%s389_s29] sm:$0x3]  ;;  %v870_v51 = vld [vmem:[%s1691_s6 + $0x8] sm:$0xff] }
  0x14   : > { %1445 = vmatpush3.xpose.msk.msra.mxu0 %vm416_vm0, %v431_v8  ;;  %1446 = vmatprep.mubr.msk.f32.mxu0 %vm1553_vm1, %v1552_v0  ;;  %415 = vst.msk [vmem:[#allocation3 + $0x18] sm:$0xff] %vm407_vm2, %v1552_v0  ;;  %v739_v15 = vunpack.c.0.s8 %v738_v14  ;;  %v871_v1 = vld [vmem:[%s1691_s6 + $0x10] sm:$0xff]  ;;  %v872_v4 = vld [vmem:[%s1691_s6 + $0x18] sm:$0xff] }
  0x15   : > { %1450 = vmatpush3.xpose.msk.msra.mxu1 %vm416_vm0, %v432_v10  ;;  %1451 = vmatprep.mubr.msk.f32.mxu1 %vm1553_vm1, %v1552_v0 }
  0x16   : > { %1454 = vmatprep.subr.mxu0 %v1552_v0  ;;  %1459 = vmatprep.subr.mxu1 %v1552_v0  ;;  %v740_v16 = vcvt.s32.f32 %v739_v15  ;;  %v1666_v34 = vld [vmem:[#allocation2] sm:$0xff] }
  0x17   : > { %1447 = vmatmul.mubr.msk.f32.vlgmr.msra.gmra.mxu0 %vm416_vm0, %v427_v11  ;;  %v749_v37 = vld [vmem:[#allocation2 + $0x8] sm:$0xff] }
  0x18   : > { %1452 = vmatmul.mubr.msk.f32.vlgmr.msra.gmra.mxu1 %vm416_vm0, %v428_v12  ;;  %1456 = vmatprep.mubr.msk.f32.mxu0 %vm1553_vm1, %v1552_v0  ;;  %vm741_vm3 = vcmp.eq.f32.partialorder %v740_v16, 0.0  ;;  %v1671_v38 = vld [vmem:[#allocation2 + $0x10] sm:$0xff] }
  0x19   : > { %1461 = vmatprep.mubr.msk.f32.mxu1 %vm1553_vm1, %v1552_v0  ;;  %v1679_v44 = vld [vmem:[#allocation2 + $0x18] sm:$0xff]  ;;  %1455 = vmatpush3.msra.mxu0 %v869_v50 }
  0x1a   : > { %1464 = vmatprep.subr.mxu0 %v1552_v0  ;;  %1460 = vmatpush3.msra.mxu1 %v870_v51 }
  0x1b   : > { %1469 = vmatprep.subr.mxu1 %v1552_v0 }
  0xd3   : > { %v506_v17 = vpop.f32.mrf.mxu0  ;;  %v582_v18 = vpop.f32.mrf.mxu1 }
  0xd4   : > { %v744_v19 = vsel %vm741_vm3, -1e+09, %v506_v17  ;;  %v745_v20 = vsel %vm741_vm3, -1e+09, %v582_v18  ;;  %v812_v18 = vld [vmem:[#allocation3] sm:$0xff] }
  0xd5   : > { %v1438_v21 = vpop.f32.mrf.mxu0  ;;  %v752_v22 = vsel %vm416_vm0, %v744_v19, -inf  ;;  %v1443_v23 = vpop.f32.mrf.mxu1  ;;  %v755_v25 = vsel %vm416_vm0, %v745_v20, -inf }
  0xd6   : > { %753 = vmax.xlane.f32.xlu0 %v752_v22  ;;  %v813_v21 = vld [vmem:[#allocation3 + $0x8] sm:$0xff] }
  0xd7   : > { %v658_v24 = vpop.f32.mrf.mxu0 }
  0xd8   : > { %v746_v26 = vsel %vm741_vm3, -1e+09, %v658_v24  ;;  %v734_v27 = vpop.f32.mrf.mxu1 }
  0xd9   : > { %v1448_v28 = vpop.f32.mrf.mxu0  ;;  %v747_v29 = vsel %vm741_vm3, -1e+09, %v734_v27  ;;  %v758_v30 = vsel %vm416_vm0, %v746_v26, -inf }
  0xda   : > { %756 = vmax.xlane.f32.xlu0 %v755_v25  ;;  %759 = vmax.xlane.f32.xlu1 %v758_v30  ;;  %v1453_v31 = vpop.f32.mrf.mxu1  ;;  %v761_v32 = vsel %vm416_vm0, %v747_v29, -inf  ;;  %v814_v25 = vld [vmem:[#allocation3 + $0x10] sm:$0xff] }
  0xde   : > { %762 = vmax.xlane.f32.xlu1 %v761_v32 }
 0x15f   : > { %v754_v35 = vpop.xlane.xlu0 %753 }
 0x160   : > { %v1669_v36 = vmax.f32 %v1666_v34, %v754_v35 }
 0x162   : > { %v768_v39 = vsub.f32 %v1666_v34, %v1669_v36  ;;  %1173 = vst.msk [vmem:[#allocation2] sm:$0xff] %vm407_vm2, %v1669_v36  ;;  %782 = vperm.xlu0 %1502, %v1669_v36  }
 0x163   : > { %v757_v40 = vpop.xlane.xlu0 %756  ;;  %v760_v41 = vpop.xlane.xlu1 %759 }
 0x164   : > { %v765_v42 = vmax.f32 %v749_v37, %v757_v40  ;;  %v766_v43 = vmax.f32 %v1671_v38, %v760_v41  ;;  %v772_v11 = vmul.f32 1.442695, %v768_v39 }
 0x166   : > { %v769_v45 = vsub.f32 %v749_v37, %v765_v42  ;;  %1174 = vst.msk [vmem:[#allocation2 + $0x8] sm:$0xff] %vm407_vm2, %v765_v42  ;;  %787 = vperm.xlu1 %1503, %v765_v42   ;;  %v770_v46 = vsub.f32 %v1671_v38, %v766_v43  ;;  %1175 = vst.msk [vmem:[#allocation2 + $0x10] sm:$0xff] %vm407_vm2, %v766_v43  ;;  %v841_v42 = vld [vmem:[#allocation4] sm:$0xff] }
 0x167   : > { %v763_v47 = vpop.xlane.xlu1 %762 }
 0x168   : > { %v767_v48 = vmax.f32 %v1679_v44, %v763_v47  ;;  %v774_v9 = vmul.f32 1.442695, %v769_v45  ;;  %v776_v13 = vmul.f32 1.442695, %v770_v46  ;;  %v842_v45 = vld [vmem:[#allocation4 + $0x8] sm:$0xff] }
 0x16a   : > { %792 = vperm.xlu1 %1503, %v766_v43   ;;  %v771_v49 = vsub.f32 %v1679_v44, %v767_v48  ;;  %1176 = vst.msk [vmem:[#allocation2 + $0x18] sm:$0xff] %vm407_vm2, %v767_v48 }
 0x16c   : > { %v778_v14 = vmul.f32 1.442695, %v771_v49 }
 0x16e   : > { %797 = vperm.xlu1 %1503, %v767_v48  }
 0x1dd   : > { %v783_v52 = vpop.permute.xlu0 %782 }
 0x1de   : > { %v800_v53 = vsub.f32 %v744_v19, %v783_v52  ;;  %v843_v52 = vld [vmem:[#allocation4 + $0x10] sm:$0xff] }
 0x1e0   : > { %v804_v54 = vmul.f32 1.442695, %v800_v53 }
 0x1e1   : > { %v788_v55 = vpop.permute.xlu1 %787 }
 0x1e2   : > { %1504 = vpow2.f32 %v804_v54  ;;  %v801_v56 = vsub.f32 %v745_v20, %v788_v55 }
 0x1e4   : > { %v806_v57 = vmul.f32 1.442695, %v801_v56 }
 0x1e5   : > { %v793_v58 = vpop.permute.xlu1 %792 }
 0x1e6   : > { %1506 = vpow2.f32 %v806_v57  ;;  %v802_v59 = vsub.f32 %v746_v26, %v793_v58  ;;  %v844_v57 = vld [vmem:[#allocation4 + $0x18] sm:$0xff] }
 0x1e8   : > { %v808_v60 = vmul.f32 1.442695, %v802_v59 }
 0x1e9   : > { %v798_v61 = vpop.permute.xlu1 %797 }
 0x1ea   : > { %1508 = vpow2.f32 %v808_v60  ;;  %v803_v62 = vsub.f32 %v747_v29, %v798_v61  ;;  %v815_v29 = vld [vmem:[#allocation3 + $0x18] sm:$0xff] }
 0x1ec   : > { %v810_v63 = vmul.f32 1.442695, %v803_v62 }
 0x1ee   : > { %1510 = vpow2.f32 %v810_v63 }
 0x1ef   : > { %v1505_v2 = vpop.eup %1504  ;;  %1512 = vpow2.f32 %v774_v9 }
 0x1f0   : > { %1457 = vmatmul.mubr.msk.f32.vlgmr.msra.gmra.mxu0 %vm416_vm0, %v1505_v2  ;;  %v820_v3 = vsel %vm416_vm0, %v1505_v2, 0.0  ;;  %1514 = vpow2.f32 %v772_v11 }
 0x1f1   : > { %821 = vadd.xlane.f32.xlu1 %v820_v3  ;;  %1465 = vmatpush3.msra.mxu0 %v871_v1  ;;  %1516 = vpow2.f32 %v776_v13 }
 0x1f2   : > { %1466 = vmatprep.mubr.msk.f32.mxu0 %vm1553_vm1, %v1552_v0  ;;  %1518 = vpow2.f32 %v778_v14 }
 0x1f3   : > { %v1507_v5 = vpop.eup %1506 }
 0x1f4   : > { %1462 = vmatmul.mubr.msk.f32.vlgmr.msra.gmra.mxu1 %vm416_vm0, %v1507_v5  ;;  %v823_v6 = vsel %vm416_vm0, %v1507_v5, 0.0 }
 0x1f5   : > { %824 = vadd.xlane.f32.xlu0 %v823_v6  ;;  %1470 = vmatpush3.msra.mxu1 %v872_v4 }
 0x1f6   : > { %1471 = vmatprep.mubr.msk.f32.mxu1 %vm1553_vm1, %v1552_v0 }
 0x1f7   : > { %v1509_v7 = vpop.eup %1508 }
 0x1f8   : > { %1467 = vmatmul.mubr.msk.f32.vlgmr.msra.gmra.mxu0 %vm416_vm0, %v1509_v7  ;;  %v826_v8 = vsel %vm416_vm0, %v1509_v7, 0.0 }
 0x1f9   : > { %827 = vadd.xlane.f32.xlu1 %v826_v8 }
 0x1fb   : > { %v1511_v10 = vpop.eup %1510 }
 0x1fc   : > { %1472 = vmatmul.mubr.msk.f32.vlgmr.msra.gmra.mxu1 %vm416_vm0, %v1511_v10  ;;  %v829_v12 = vsel %vm416_vm0, %v1511_v10, 0.0  ;;  %v1513_v0 = vpop.eup %1512 }
 0x1fd   : > { %830 = vadd.xlane.f32.xlu1 %v829_v12  ;;  %v1515_v15 = vpop.eup %1514  ;;  %v817_v23 = vmul.f32 %v1513_v0, %v813_v21 }
 0x1fe   : > { %v1517_v16 = vpop.eup %1516  ;;  %v816_v19 = vmul.f32 %v1515_v15, %v812_v18 }
 0x1ff   : > { %v1519_v17 = vpop.eup %1518  ;;  %v818_v27 = vmul.f32 %v1517_v16, %v814_v25 }
 0x200   : > { %v819_v32 = vmul.f32 %v1519_v17, %v815_v29 }
 0x20b   : > { %852 = vperm.xlu0 %1502, %v1513_v0  }
 0x20e   : > { %847 = vperm.xlu1 %1503, %v1515_v15  }
 0x212   : > { %857 = vperm.xlu1 %1503, %v1517_v16  }
 0x216   : > { %862 = vperm.xlu1 %1503, %v1519_v17  }
 0x27a   : > { %v822_v20 = vpop.xlane.xlu1 %821 }
 0x27b   : > { %v832_v22 = vadd.f32 %v822_v20, %v816_v19 }
 0x27d   : > { %837 = vst.msk [vmem:[#allocation3] sm:$0xff] %vm407_vm2, %v832_v22 }
 0x27e   : > { %v825_v24 = vpop.xlane.xlu0 %824 }
 0x27f   : > { %v833_v26 = vadd.f32 %v825_v24, %v817_v23 }
 0x281   : > { %838 = vst.msk [vmem:[#allocation3 + $0x8] sm:$0xff] %vm407_vm2, %v833_v26 }
 0x282   : > { %v828_v28 = vpop.xlane.xlu1 %827 }
 0x283   : > { %v834_v30 = vadd.f32 %v828_v28, %v818_v27 }
 0x284   : > { %v1180_v31 = vld [vmem:[#allocation3] sm:$0xff] }
 0x285   : > { %839 = vst.msk [vmem:[#allocation3 + $0x10] sm:$0xff] %vm407_vm2, %v834_v30  ;;  %1520 = vrcp.f32 %v1180_v31 }
 0x286   : > { %v831_v33 = vpop.xlane.xlu1 %830  ;;  %v853_v46 = vpop.permute.xlu0 %852 }
 0x287   : > { %v835_v34 = vadd.f32 %v831_v33, %v819_v32  ;;  %v866_v51 = vmul.f32 %v853_v46, %v842_v45 }
 0x288   : > { %v1181_v35 = vld [vmem:[#allocation3 + $0x8] sm:$0xff] }
 0x289   : > { %840 = vst.msk [vmem:[#allocation3 + $0x18] sm:$0xff] %vm407_vm2, %v835_v34  ;;  %1522 = vrcp.f32 %v1181_v35 }
 0x28a   : > { %v848_v43 = vpop.permute.xlu1 %847 }
 0x28b   : > { %v865_v44 = vmul.f32 %v848_v43, %v841_v42 }
 0x28c   : > { %v1182_v36 = vld [vmem:[#allocation3 + $0x10] sm:$0xff] }
 0x28d   : > { %1524 = vrcp.f32 %v1182_v36 }
 0x28e   : > { %v858_v49 = vpop.permute.xlu1 %857 }
 0x28f   : > { %v867_v56 = vmul.f32 %v858_v49, %v843_v52 }
 0x290   : > { %v1183_v37 = vld [vmem:[#allocation3 + $0x18] sm:$0xff] }
 0x291   : > { %1526 = vrcp.f32 %v1183_v37 }
 0x292   : > { %v1521_v38 = vpop.eup %1520  ;;  %v863_v58 = vpop.permute.xlu1 %862 }
 0x293   : > { %1194 = vperm.xlu1 %1503, %v1521_v38   ;;  %v868_v62 = vmul.f32 %v863_v58, %v844_v57 }
 0x296   : > { %v1523_v39 = vpop.eup %1522 }
 0x297   : > { %1199 = vperm.xlu0 %1502, %v1523_v39  }
 0x29a   : > { %v1525_v40 = vpop.eup %1524 }
 0x29b   : > { %1204 = vperm.xlu1 %1503, %v1525_v40  }
 0x29e   : > { %v1527_v41 = vpop.eup %1526 }
 0x29f   : > { %1209 = vperm.xlu0 %1502, %v1527_v41  }
 0x2b0   : > { %v942_v47 = vpop.f32.mrf.mxu0 }
 0x2b1   : > { %v1165_v48 = vadd.f32 %v942_v47, %v865_v44 }
 0x2b2   : > { %v1458_v50 = vpop.f32.mrf.mxu0 }
 0x2b3   : > { %1169 = vst.msk [vmem:[#allocation4] sm:$0xff] %vm416_vm0, %v1165_v48 }
 0x2b4   : > { %v1015_v53 = vpop.f32.mrf.mxu1 }
 0x2b5   : > { %v1166_v54 = vadd.f32 %v1015_v53, %v866_v51 }
 0x2b6   : > { %v1463_v55 = vpop.f32.mrf.mxu1 }
 0x2b7   : > { %1170 = vst.msk [vmem:[#allocation4 + $0x8] sm:$0xff] %vm416_vm0, %v1166_v54 }
 0x2b8   : > { %v1088_v59 = vpop.f32.mrf.mxu0 }
 0x2b9   : > { %v1167_v60 = vadd.f32 %v1088_v59, %v867_v56 }
 0x2ba   : > { %v1468_v61 = vpop.f32.mrf.mxu0  ;;  %v1188_v4 = vld [vmem:[#allocation4] sm:$0xff] }
 0x2bb   : > { %1171 = vst.msk [vmem:[#allocation4 + $0x10] sm:$0xff] %vm416_vm0, %v1167_v60 }
 0x2bc   : > { %v1161_v63 = vpop.f32.mrf.mxu1 }
 0x2bd   : > { %v1168_v1 = vadd.f32 %v1161_v63, %v868_v62 }
 0x2be   : > { %v1473_v2 = vpop.f32.mrf.mxu1  ;;  %v1189_v6 = vld [vmem:[#allocation4 + $0x8] sm:$0xff] }
 0x2bf   : > { %1172 = vst.msk [vmem:[#allocation4 + $0x18] sm:$0xff] %vm416_vm0, %v1168_v1 }
 0x2c2   : > { %v1190_v10 = vld [vmem:[#allocation4 + $0x10] sm:$0xff] }
 0x2c6   : > { %v1191_v13 = vld [vmem:[#allocation4 + $0x18] sm:$0xff] }
 0x30e   : > { %v1195_v3 = vpop.permute.xlu1 %1194 }
 0x30f   : > { %v1212_v5 = vmul.f32 %v1195_v3, %v1188_v4 }
 0x311   : > { %1216 = vst.msk [vmem:[%s401_s9] sm:$0xff] %vm416_vm0, %v1212_v5 }
 0x312   : > { %v1200_v7 = vpop.permute.xlu0 %1199 }
 0x313   : > { %v1213_v8 = vmul.f32 %v1200_v7, %v1189_v6 }
 0x315   : > { %1217 = vst.msk [vmem:[%s401_s9 + $0x8] sm:$0xff] %vm416_vm0, %v1213_v8 }
 0x316   : > { %v1205_v9 = vpop.permute.xlu1 %1204 }
 0x317   : > { %v1214_v11 = vmul.f32 %v1205_v9, %v1190_v10 }
 0x319   : > { %1218 = vst.msk [vmem:[%s401_s9 + $0x10] sm:$0xff] %vm416_vm0, %v1214_v11 }
 0x31a   : > { %v1210_v12 = vpop.permute.xlu0 %1209 }
 0x31b   : > { %v1215_v14 = vmul.f32 %v1210_v12, %v1191_v13 }
 0x31d   : > { %1219 = vst.msk [vmem:[%s401_s9 + $0x18] sm:$0xff] %vm416_vm0, %v1215_v14 }
 0x31e PF: > { %s14_s17 = sadd.s32 1, %s1550_s17   ;;  %s1741_s15 = smov %s1546_s16 }
 0x31f   : > { %p11_p5 = scmp.ge.s32.totalorder %s14_s17, 4   ;;  %s1742_s16 = smov %s1744_s18 }
 0x321   :  { %13 = sbr.rel (!%p11_p5) target bundleno = 2 (0x2), region = 83 }

</bundles_post_ra>
